<compile_context>
chip_gen: v7x
topology: tpu7x:2x2x1
jax: 0.10.0
libtpu: 0.0.40
codegen_flags: <defaults>
</compile_context>

<pallas_src>
import functools

import jax
import jax.numpy as jnp
from jax.experimental import pallas as pl
from jax.experimental.pallas import tpu as pltpu

# ----------------------------- config -----------------------------------------
INPUT_DIM = 4     # input_dim  (channels of input tensor)
HIDDEN_DIM = 32   # hidden_dim (channels of hidden / cell state)
KER = 3           # kernel_size
PAD = KER // 2    # 'same' padding as in the PyTorch module


# ----------------------------- Pallas kernel -----------------------------------
def _convlstm_cell_kernel(p_ref, c_ref, wt_ref, b_ref, h_out_ref, c_out_ref, *,
                          Chid):
    """Fused ConvLSTM cell, channels-on-sublanes layout.

    p_ref     : (1, Kp, cb)     im2col patches, rows ordered (dy, dx, channel)
    c_ref     : (1, Chid, cb)   cell state (NCHW spatially flattened)
    wt_ref    : (4*Chid, Kp)    transposed conv weight (grid-invariant)
    b_ref     : (4*Chid, 1)     bias (grid-invariant)
    h_out_ref : (1, Chid, cb)
    c_out_ref : (1, Chid, cb)
    """
    # Single MXU matmul over the fused x/h contraction (K = Kp = 9*(Cin+Chid)),
    # f32 accumulation; bias is a cheap VPU lane-broadcast add.
    gates = jnp.dot(wt_ref[...], p_ref[0],
                    preferred_element_type=jnp.float32) + b_ref[...]  # (4C, cb)

    # Sublane-aligned gate split: sigmoid only on i/f/o rows, tanh only on g rows.
    ifo = jax.nn.sigmoid(gates[:3 * Chid, :])     # (3*Chid, cb)
    g = jnp.tanh(gates[3 * Chid:, :])             # (Chid,  cb)

    i = ifo[0 * Chid:1 * Chid]
    f = ifo[1 * Chid:2 * Chid]
    o = ifo[2 * Chid:3 * Chid]

    c_next = f * c_ref[0] + i * g
    h_next = o * jnp.tanh(c_next)

    c_out_ref[0] = c_next
    h_out_ref[0] = h_next


# ----------------------------- wrapper ------------------------------------------
@jax.jit
def convlstm_cell_forward(x_nchw, h_nchw, c_nchw, w_hwio, b):
    """PyTorch-layout ConvLSTMCell forward.

    x_nchw : (N, Cin, H, W)
    h_nchw, c_nchw : (N, Chid, H, W)
    w_hwio : (K, K, Cin + Chid, 4*Chid)   combined conv weight, HWIO layout
    b      : (4*Chid,)
    returns (h_next, c_next), each (N, Chid, H, W)
    """
    N, Cin, H, W = x_nchw.shape
    Chid = h_nchw.shape[1]
    K = w_hwio.shape[0]
    pad = K // 2
    Ctot = Cin + Chid
    Kp = K * K * Ctot
    HW = H * W
    C4 = 4 * Chid
    f32 = jnp.float32

    # Channel concat + zero pad + im2col, all in native NCHW (no transposes).
    comb = jnp.concatenate([x_nchw.astype(f32), h_nchw.astype(f32)], axis=1)
    comb_p = jnp.pad(comb, ((0, 0), (0, 0), (pad, pad), (pad, pad)))
    taps = [comb_p[:, :, dy:dy + H, dx:dx + W]
            for dy in range(K) for dx in range(K)]          # 9 x (N, Ctot, H, W)
    # Row order (dy, dx, channel) -- must match the weight reshape below.
    patches = jnp.stack(taps, axis=1).reshape(N, Kp, HW)    # (N, 9*Ctot, HW)

    # HWIO (K, K, Ctot, 4C) -> rows (dy, dx, c) -> transpose to (4C, Kp).
    wt = w_hwio.astype(f32).reshape(Kp, C4).T               # (4C, Kp)
    b2 = b.astype(f32).reshape(C4, 1)                       # (4C, 1)
    c_in = c_nchw.astype(f32).reshape(N, Chid, HW)          # (N, Chid, HW)

    # Column-block policy: one batch element per grid point when N>=2 (v7x
    # shards them over its two TensorCores); split the HW columns when N==1 so
    # both TCs stay busy.  Blocks stay lane-dense (multiples of 128).
    if N >= 2 or HW % 256 != 0:
        cb = HW
    else:
        cb = HW // 2
    ncb = HW // cb

    kern = functools.partial(_convlstm_cell_kernel, Chid=Chid)
    h_next, c_next = pl.pallas_call(
        kern,
        out_shape=(jax.ShapeDtypeStruct((N, Chid, HW), f32),
                   jax.ShapeDtypeStruct((N, Chid, HW), f32)),
        grid=(N, ncb),
        in_specs=[
            pl.BlockSpec((1, Kp, cb), lambda n, j: (n, 0, j)),
            pl.BlockSpec((1, Chid, cb), lambda n, j: (n, 0, j)),
            pl.BlockSpec((C4, Kp), lambda n, j: (0, 0)),    # grid-invariant
            pl.BlockSpec((C4, 1), lambda n, j: (0, 0)),     # grid-invariant
        ],
        out_specs=(pl.BlockSpec((1, Chid, cb), lambda n, j: (n, 0, j)),
                   pl.BlockSpec((1, Chid, cb), lambda n, j: (n, 0, j))),
        compiler_params=pltpu.CompilerParams(
            dimension_semantics=("parallel", "parallel"),
            vmem_limit_bytes=32 * 1024 * 1024),
    )(patches, c_in, wt, b2)

    # Outputs are already NCHW-flattened: reshape only, no transposes.
    return (h_next.reshape(N, Chid, H, W),
            c_next.reshape(N, Chid, H, W))


# ----------------------------- pure-JAX reference --------------------------------
def convlstm_cell_ref(x_nchw, h_nchw, c_nchw, w_hwio, b):
    Chid = h_nchw.shape[1]
    pad = w_hwio.shape[0] // 2
    x = jnp.transpose(x_nchw, (0, 2, 3, 1))
    h = jnp.transpose(h_nchw, (0, 2, 3, 1))
    c = jnp.transpose(c_nchw, (0, 2, 3, 1))
    comb = jnp.concatenate([x, h], axis=-1)
    gates = jax.lax.conv_general_dilated(
        comb, w_hwio, window_strides=(1, 1),
        padding=[(pad, pad), (pad, pad)],
        dimension_numbers=("NHWC", "HWIO", "NHWC")) + b.reshape(1, 1, 1, -1)
    i = jax.nn.sigmoid(gates[..., 0:Chid])
    f = jax.nn.sigmoid(gates[..., Chid:2 * Chid])
    o = jax.nn.sigmoid(gates[..., 2 * Chid:3 * Chid])
    g = jnp.tanh(gates[..., 3 * Chid:4 * Chid])
    c_next = f * c + i * g
    h_next = o * jnp.tanh(c_next)
    return (jnp.transpose(h_next, (0, 3, 1, 2)),
            jnp.transpose(c_next, (0, 3, 1, 2)))


# ----------------------------- main ----------------------------------------------
if __name__ == "__main__":
    key = jax.random.PRNGKey(0)
    kx, kh, kc, kw, kb = jax.random.split(key, 5)

    N, H, W = 2, 16, 16
    x = jax.random.normal(kx, (N, INPUT_DIM, H, W), jnp.float32)
    h_cur = jax.random.normal(kh, (N, HIDDEN_DIM, H, W), jnp.float32)
    c_cur = jax.random.normal(kc, (N, HIDDEN_DIM, H, W), jnp.float32)
    # Combined-conv parameters (Conv2d(Cin+Chid -> 4*Chid, k=3, pad=1, bias=True))
    w = 0.1 * jax.random.normal(
        kw, (KER, KER, INPUT_DIM + HIDDEN_DIM, 4 * HIDDEN_DIM), jnp.float32)
    b = 0.1 * jax.random.normal(kb, (4 * HIDDEN_DIM,), jnp.float32)

    h_next, c_next = convlstm_cell_forward(x, h_cur, c_cur, w, b)
    h_next, c_next = jax.block_until_ready((h_next, c_next))
    assert h_next.shape == (N, HIDDEN_DIM, H, W), h_next.shape
    assert c_next.shape == (N, HIDDEN_DIM, H, W), c_next.shape

    h_want, c_want = convlstm_cell_ref(x, h_cur, c_cur, w, b)
    err = max(float(jnp.max(jnp.abs(h_next - h_want))),
              float(jnp.max(jnp.abs(c_next - c_want))))
    assert err < 2e-3, f"mismatch vs reference: {err}"

    print("KERNEL_OK")
</pallas_src>

<mosaic_0001>
module attributes {stable_mosaic.version = 11 : i64} {
  func.func @_convlstm_cell_kernel(%arg0: i32, %arg1: i32, %arg2: memref<1x324x256xf32, #tpu.memory_space<vmem>>, %arg3: memref<1x32x256xf32, #tpu.memory_space<vmem>>, %arg4: memref<128x324xf32, #tpu.memory_space<vmem>>, %arg5: memref<128x1xf32, #tpu.memory_space<vmem>>, %arg6: memref<1x32x256xf32, #tpu.memory_space<vmem>>, %arg7: memref<1x32x256xf32, #tpu.memory_space<vmem>>) attributes {dimension_semantics = [#tpu.dimension_semantics<parallel>, #tpu.dimension_semantics<parallel>], iteration_bounds = array<i64: 2, 1>, scalar_prefetch = 0 : i64, scratch_operands = 0 : i64, tpu.core_type = #tpu.core_type<tc>, window_params = [{transform_indices = @transform_0, window_bounds = array<i64: 1, 324, 256>}, {transform_indices = @transform_1, window_bounds = array<i64: 1, 32, 256>}, {pipeline_mode = #tpu.pipeline_mode<synchronous>, transform_indices = @transform_2, window_bounds = array<i64: 128, 324>}, {pipeline_mode = #tpu.pipeline_mode<synchronous>, transform_indices = @transform_3, window_bounds = array<i64: 128, 1>}, {transform_indices = @transform_4, window_bounds = array<i64: 1, 32, 256>}, {transform_indices = @transform_5, window_bounds = array<i64: 1, 32, 256>}]} {
    %c0 = arith.constant 0 : index
    %c0_0 = arith.constant 0 : index
    %0 = vector.load %arg4[%c0, %c0_0] : memref<128x324xf32, #tpu.memory_space<vmem>>, vector<128x324xf32>
    %c0_1 = arith.constant 0 : index
    %c0_2 = arith.constant 0 : index
    %c0_3 = arith.constant 0 : index
    %1 = vector.load %arg2[%c0_1, %c0_2, %c0_3] : memref<1x324x256xf32, #tpu.memory_space<vmem>>, vector<1x324x256xf32>
    %2 = vector.shape_cast %1 : vector<1x324x256xf32> to vector<324x256xf32>
    %cst = arith.constant dense<0.000000e+00> : vector<128x256xf32>
    %3 = tpu.matmul %0, %2, %cst {dimension_numbers = #tpu.dot_dimension_numbers<[1], [0], [0], [1], [0, 0, 1, 1], [], []>} : vector<128x324xf32>, vector<324x256xf32>, vector<128x256xf32> -> vector<128x256xf32>
    %c0_4 = arith.constant 0 : index
    %c0_5 = arith.constant 0 : index
    %4 = vector.load %arg5[%c0_4, %c0_5] : memref<128x1xf32, #tpu.memory_space<vmem>>, vector<128x1xf32>
    %5 = vector.broadcast %4 : vector<128x1xf32> to vector<128x256xf32>
    %6 = arith.addf %3, %5 : vector<128x256xf32>
    %7 = vector.extract_strided_slice %6 {offsets = [0, 0], sizes = [96, 256], strides = [1, 1]} : vector<128x256xf32> to vector<96x256xf32>
    %8 = arith.negf %7 : vector<96x256xf32>
    %9 = math.exp %8 : vector<96x256xf32>
    %cst_6 = arith.constant 1.000000e+00 : f32
    %10 = vector.broadcast %cst_6 : f32 to vector<96x256xf32>
    %11 = arith.addf %10, %9 : vector<96x256xf32>
    %12 = arith.divf %10, %11 : vector<96x256xf32>
    %13 = vector.extract_strided_slice %6 {offsets = [96, 0], sizes = [32, 256], strides = [1, 1]} : vector<128x256xf32> to vector<32x256xf32>
    %14 = math.tanh %13 : vector<32x256xf32>
    %15 = vector.extract_strided_slice %12 {offsets = [0, 0], sizes = [32, 256], strides = [1, 1]} : vector<96x256xf32> to vector<32x256xf32>
    %16 = vector.extract_strided_slice %12 {offsets = [32, 0], sizes = [32, 256], strides = [1, 1]} : vector<96x256xf32> to vector<32x256xf32>
    %17 = vector.extract_strided_slice %12 {offsets = [64, 0], sizes = [32, 256], strides = [1, 1]} : vector<96x256xf32> to vector<32x256xf32>
    %c0_7 = arith.constant 0 : index
    %c0_8 = arith.constant 0 : index
    %c0_9 = arith.constant 0 : index
    %18 = vector.load %arg3[%c0_7, %c0_8, %c0_9] : memref<1x32x256xf32, #tpu.memory_space<vmem>>, vector<1x32x256xf32>
    %19 = vector.shape_cast %18 : vector<1x32x256xf32> to vector<32x256xf32>
    %20 = arith.mulf %16, %19 : vector<32x256xf32>
    %21 = arith.mulf %15, %14 : vector<32x256xf32>
    %22 = arith.addf %20, %21 : vector<32x256xf32>
    %23 = math.tanh %22 : vector<32x256xf32>
    %24 = arith.mulf %17, %23 : vector<32x256xf32>
    %c0_10 = arith.constant 0 : index
    %c0_11 = arith.constant 0 : index
    %c0_12 = arith.constant 0 : index
    %25 = vector.load %arg7[%c0_10, %c0_11, %c0_12] : memref<1x32x256xf32, #tpu.memory_space<vmem>>, vector<1x32x256xf32>
    %26 = vector.shape_cast %25 : vector<1x32x256xf32> to vector<32x256xf32>
    %27 = vector.shape_cast %22 : vector<32x256xf32> to vector<1x32x256xf32>
    tpu.vector_store %arg7[%c0_10, %c0_11, %c0_12], %27 {strides = array<i32>} : memref<1x32x256xf32, #tpu.memory_space<vmem>>, vector<1x32x256xf32>,
    %c0_13 = arith.constant 0 : index
    %c0_14 = arith.constant 0 : index
    %c0_15 = arith.constant 0 : index
    %28 = vector.load %arg6[%c0_13, %c0_14, %c0_15] : memref<1x32x256xf32, #tpu.memory_space<vmem>>, vector<1x32x256xf32>
    %29 = vector.shape_cast %28 : vector<1x32x256xf32> to vector<32x256xf32>
    %30 = vector.shape_cast %24 : vector<32x256xf32> to vector<1x32x256xf32>
    tpu.vector_store %arg6[%c0_13, %c0_14, %c0_15], %30 {strides = array<i32>} : memref<1x32x256xf32, #tpu.memory_space<vmem>>, vector<1x32x256xf32>,
    return
  }
  func.func @transform_0(%arg0: i32, %arg1: i32) -> (i32, i32, i32) {
    %c0_i32 = arith.constant 0 : i32
    %c0_i32_0 = arith.constant 0 : i32
    return %arg0, %c0_i32, %arg1 : i32, i32, i32
  }
  func.func @transform_1(%arg0: i32, %arg1: i32) -> (i32, i32, i32) {
    %c0_i32 = arith.constant 0 : i32
    %c0_i32_0 = arith.constant 0 : i32
    return %arg0, %c0_i32, %arg1 : i32, i32, i32
  }
  func.func @transform_2(%arg0: i32, %arg1: i32) -> (i32, i32) {
    %c0_i32 = arith.constant 0 : i32
    %c0_i32_0 = arith.constant 0 : i32
    %c0_i32_1 = arith.constant 0 : i32
    return %c0_i32, %c0_i32_0 : i32, i32
  }
  func.func @transform_3(%arg0: i32, %arg1: i32) -> (i32, i32) {
    %c0_i32 = arith.constant 0 : i32
    %c0_i32_0 = arith.constant 0 : i32
    %c0_i32_1 = arith.constant 0 : i32
    return %c0_i32, %c0_i32_0 : i32, i32
  }
  func.func @transform_4(%arg0: i32, %arg1: i32) -> (i32, i32, i32) {
    %c0_i32 = arith.constant 0 : i32
    %c0_i32_0 = arith.constant 0 : i32
    return %arg0, %c0_i32, %arg1 : i32, i32, i32
  }
  func.func @transform_5(%arg0: i32, %arg1: i32) -> (i32, i32, i32) {
    %c0_i32 = arith.constant 0 : i32
    %c0_i32_0 = arith.constant 0 : i32
    return %arg0, %c0_i32, %arg1 : i32, i32, i32
  }
}

</mosaic_0001>

<bundles_post_ra>
// kernel: convlstm_cell_forward.1
= control target key start
LH: loop header
LB: loop body
LE: loop exit
PB: predicated region body
PF: predicated region fallthrough
CT: control target
= control target key end

     0   :  { %s1715_s18 = smov 0   ;;  %s1717_s19 = smov 0   ;;  %s2196_s0 = inlined_call_operand.vmem [shape: f32[2,324,256], index: 0, kind: input, shape index: {}]   ;;  %s2197_s1 = inlined_call_operand.vmem [shape: f32[2,32,256], index: 1, kind: input, shape index: {}]   ;;  %s2198_s2 = inlined_call_operand.vmem [shape: f32[128,324], index: 2, kind: input, shape index: {}]   ;;  %s2199_s3 = inlined_call_operand.vmem [shape: f32[128,1], index: 3, kind: input, shape index: {}]   ;;  %s2200_s4 = inlined_call_operand.vmem [shape: f32[2,32,256], index: 4, kind: output, shape index: {0}]   ;;  %s2201_s5 = inlined_call_operand.vmem [shape: f32[2,32,256], index: 5, kind: output, shape index: {1}]  }
   0x1   :  { %s1719_s20 = smov 0  }
   0x2 LB: > { %s28_s21 = sadd.s32 1, %s1677_s19  ;;  %p1303_p0 = scmp.ge.s32.totalorder %s1681_s20, 1  ;;  %s1681_s20 = sphi %s1719_s20, %s16_s20   ;;  %s1677_s19 = sphi %s1717_s19, %s2203_s19   ;;  %s1673_s18 = sphi %s1715_s18, %s2202_s18  }
   0x3   : > { %p30_p1 = scmp.ge.s32.totalorder %s28_s21, 2  ;;  %p230_p2 = scmp.lt.s32.totalorder %s1681_s20, 3 }
   0x5   : > { %s2205_s21 = smov (%p30_p1, %s28_s21), 0  ;;  %p231_p3 = pnand %p1303_p0, %p230_p2 }
   0x6   : > { %p285_p4 = scmp.lt.s32.totalorder (!%p231_p3), %s1673_s18, 1  ;;  %v325_v0 = vld [vmem:[%s2198_s2 + $0x8] sm:$0xff] (!%p231_p3)  ;;  %v1683_v1 = vmov (!%p231_p3), 0.0   ;;  %v1684_v5 = vmov (!%p231_p3), 0   ;;  %vm599_vm0 = vcmask (!%p231_p3), 1043456   ;;  %vm550_vm1 = vcmask (!%p231_p3), 556032  }
   0x7   : > { %234 = sbr.rel (%p231_p3) target bundleno = 392 (0x188), region = 36  ;;  %670 = vmatprep.mubr.f32.mxu1 (!%p231_p3), %v325_v0  ;;  %831 = vmatprep.mubr.f32.mxu0 (!%p231_p3), %v1683_v1 }
   0x8   : > { %1529 = vset.pattern.permute.xlu0 (!%p231_p3), %v1684_v5  ;;  %1530 = vset.pattern.permute.xlu1 (!%p231_p3), %v1684_v5 }
   0xe   : > { %s2207_s18 = smov (!%p285_p4, %s1673_s18), 1 }
   0xf   : > { %s1502_s24 = smul.u32 656, %s2207_s18 }
  0x11   : > { %s1743_s27 = scalar_lea.vmem %s2196_s0, %s1502_s24 }
  0x12   : > { %v373_v2 = vld [vmem:[%s1743_s27 + $0x8] sm:$0xff]  ;;  %v375_v3 = vld [vmem:[%s1743_s27 + $0x18] sm:$0xff]  ;;  %v372_v4 = vld [vmem:[%s1743_s27] sm:$0xff] }
  0x13   : > { %v1358_v6 = vpack.c.bf16 %v375_v3, %v373_v2  ;;  %v374_v7 = vld [vmem:[%s1743_s27 + $0x10] sm:$0xff]  ;;  %v377_v8 = vld [vmem:[%s1743_s27 + $0x28] sm:$0xff]  ;;  %v379_v9 = vld [vmem:[%s1743_s27 + $0x38] sm:$0xff] }
  0x14   : > { %v1360_v10 = vpack.c.bf16 %v374_v7, %v372_v4  ;;  %v1362_v11 = vpack.c.bf16 %v379_v9, %v377_v8  ;;  %v376_v12 = vld [vmem:[%s1743_s27 + $0x20] sm:$0xff]  ;;  %v378_v13 = vld [vmem:[%s1743_s27 + $0x30] sm:$0xff]  ;;  %v381_v14 = vld [vmem:[%s1743_s27 + $0x48] sm:$0xff] }
  0x15   : > { %1359 = vmatprep.subr.bf16.mxu1 %v1358_v6  ;;  %v383_v15 = vld [vmem:[%s1743_s27 + $0x58] sm:$0xff]  ;;  %v1364_v16 = vpack.c.bf16 %v378_v13, %v376_v12  ;;  %v380_v18 = vld [vmem:[%s1743_s27 + $0x40] sm:$0xff]  ;;  %v382_v19 = vld [vmem:[%s1743_s27 + $0x50] sm:$0xff] }
  0x16   : > { %1361 = vmatpush1.bf16.msra.mxu1 %v1360_v10  ;;  %v1366_v17 = vpack.c.bf16 %v383_v15, %v381_v14  ;;  %v385_v20 = vld [vmem:[%s1743_s27 + $0x68] sm:$0xff]  ;;  %v387_v21 = vld [vmem:[%s1743_s27 + $0x78] sm:$0xff]  ;;  %v1368_v22 = vpack.c.bf16 %v382_v19, %v380_v18  ;;  %v384_v24 = vld [vmem:[%s1743_s27 + $0x60] sm:$0xff] }
  0x17   : > { %1363 = vmatprep.subr.bf16.mxu1 %v1362_v11  ;;  %v1370_v23 = vpack.c.bf16 %v387_v21, %v385_v20  ;;  %v386_v25 = vld [vmem:[%s1743_s27 + $0x70] sm:$0xff]  ;;  %v389_v26 = vld [vmem:[%s1743_s27 + $0x88] sm:$0xff]  ;;  %v391_v27 = vld [vmem:[%s1743_s27 + $0x98] sm:$0xff] }
  0x18   : > { %v1372_v28 = vpack.c.bf16 %v386_v25, %v384_v24  ;;  %v1374_v29 = vpack.c.bf16 %v391_v27, %v389_v26  ;;  %v388_v30 = vld [vmem:[%s1743_s27 + $0x80] sm:$0xff]  ;;  %v390_v31 = vld [vmem:[%s1743_s27 + $0x90] sm:$0xff]  ;;  %v393_v32 = vld [vmem:[%s1743_s27 + $0xa8] sm:$0xff] }
  0x19   : > { %v395_v33 = vld [vmem:[%s1743_s27 + $0xb8] sm:$0xff]  ;;  %v1376_v34 = vpack.c.bf16 %v390_v31, %v388_v30  ;;  %v392_v35 = vld [vmem:[%s1743_s27 + $0xa0] sm:$0xff]  ;;  %v437_v36 = vld [vmem:[%s1743_s27 + $0x208] sm:$0xff] }
  0x1a   : > { %1365 = vmatpush1.bf16.msra.mxu1 %v1364_v16  ;;  %v439_v37 = vld [vmem:[%s1743_s27 + $0x218] sm:$0xff]  ;;  %v1378_v38 = vpack.c.bf16 %v395_v33, %v393_v32  ;;  %v394_v39 = vld [vmem:[%s1743_s27 + $0xb0] sm:$0xff]  ;;  %v436_v41 = vld [vmem:[%s1743_s27 + $0x200] sm:$0xff] }
  0x1b   : > { %1367 = vmatprep.subr.bf16.mxu1 %v1366_v17  ;;  %v1422_v40 = vpack.c.bf16 %v439_v37, %v437_v36  ;;  %v438_v42 = vld [vmem:[%s1743_s27 + $0x210] sm:$0xff]  ;;  %v397_v43 = vld [vmem:[%s1743_s27 + $0xc8] sm:$0xff]  ;;  %v399_v44 = vld [vmem:[%s1743_s27 + $0xd8] sm:$0xff]  ;;  %v1380_v48 = vpack.c.bf16 %v394_v39, %v392_v35 }
  0x1c   : > { %v1424_v45 = vpack.c.bf16 %v438_v42, %v436_v41  ;;  %v441_v46 = vld [vmem:[%s1743_s27 + $0x228] sm:$0xff]  ;;  %v443_v47 = vld [vmem:[%s1743_s27 + $0x238] sm:$0xff]  ;;  %v396_v49 = vld [vmem:[%s1743_s27 + $0xc0] sm:$0xff]  ;;  %v1382_v53 = vpack.c.bf16 %v399_v44, %v397_v43 }
  0x1d   : > { %1423 = vmatprep.subr.bf16.mxu0 %v1422_v40  ;;  %v1426_v50 = vpack.c.bf16 %v443_v47, %v441_v46  ;;  %v440_v51 = vld [vmem:[%s1743_s27 + $0x220] sm:$0xff]  ;;  %v442_v52 = vld [vmem:[%s1743_s27 + $0x230] sm:$0xff]  ;;  %v445_v56 = vld [vmem:[%s1743_s27 + $0x248] sm:$0xff] }
  0x1e   : > { %1369 = vmatpush1.bf16.msra.mxu1 %v1368_v22  ;;  %1425 = vmatpush1.bf16.msra.mxu0 %v1424_v45  ;;  %v398_v54 = vld [vmem:[%s1743_s27 + $0xd0] sm:$0xff]  ;;  %v1428_v55 = vpack.c.bf16 %v442_v52, %v440_v51  ;;  %v447_v57 = vld [vmem:[%s1743_s27 + $0x258] sm:$0xff]  ;;  %v401_v58 = vld [vmem:[%s1743_s27 + $0xe8] sm:$0xff] }
  0x1f   : > { %1371 = vmatprep.subr.bf16.mxu1 %v1370_v23  ;;  %v403_v59 = vld [vmem:[%s1743_s27 + $0xf8] sm:$0xff]  ;;  %1427 = vmatprep.subr.bf16.mxu0 %v1426_v50  ;;  %v1430_v60 = vpack.c.bf16 %v447_v57, %v445_v56  ;;  %v444_v61 = vld [vmem:[%s1743_s27 + $0x240] sm:$0xff]  ;;  %v446_v62 = vld [vmem:[%s1743_s27 + $0x250] sm:$0xff]  ;;  %v1384_v63 = vpack.c.bf16 %v398_v54, %v396_v49 }
  0x20   : > { %v400_v0 = vld [vmem:[%s1743_s27 + $0xe0] sm:$0xff]  ;;  %v1432_v2 = vpack.c.bf16 %v446_v62, %v444_v61  ;;  %v449_v3 = vld [vmem:[%s1743_s27 + $0x268] sm:$0xff]  ;;  %v451_v4 = vld [vmem:[%s1743_s27 + $0x278] sm:$0xff]  ;;  %v1386_v5 = vpack.c.bf16 %v403_v59, %v401_v58 }
  0x21   : > { %v402_v6 = vld [vmem:[%s1743_s27 + $0xf0] sm:$0xff]  ;;  %v1434_v7 = vpack.c.bf16 %v451_v4, %v449_v3  ;;  %v448_v8 = vld [vmem:[%s1743_s27 + $0x260] sm:$0xff]  ;;  %v405_v10 = vld [vmem:[%s1743_s27 + $0x108] sm:$0xff] }
  0x22   : > { %1373 = vmatpush1.bf16.msra.mxu1 %v1372_v28  ;;  %1429 = vmatpush1.bf16.msra.mxu0 %v1428_v55  ;;  %v450_v9 = vld [vmem:[%s1743_s27 + $0x270] sm:$0xff]  ;;  %v407_v11 = vld [vmem:[%s1743_s27 + $0x118] sm:$0xff]  ;;  %v1388_v12 = vpack.c.bf16 %v402_v6, %v400_v0  ;;  %v404_v15 = vld [vmem:[%s1743_s27 + $0x100] sm:$0xff] }
  0x23   : > { %1375 = vmatprep.subr.bf16.mxu1 %v1374_v29  ;;  %1431 = vmatprep.subr.bf16.mxu0 %v1430_v60  ;;  %v1436_v13 = vpack.c.bf16 %v450_v9, %v448_v8  ;;  %v1390_v14 = vpack.c.bf16 %v407_v11, %v405_v10  ;;  %v406_v16 = vld [vmem:[%s1743_s27 + $0x110] sm:$0xff]  ;;  %v409_v17 = vld [vmem:[%s1743_s27 + $0x128] sm:$0xff]  ;;  %v411_v18 = vld [vmem:[%s1743_s27 + $0x138] sm:$0xff] }
  0x24   : > { %v453_v19 = vld [vmem:[%s1743_s27 + $0x288] sm:$0xf]  ;;  %v1392_v20 = vpack.c.bf16 %v406_v16, %v404_v15  ;;  %v1394_v21 = vpack.c.bf16 %v411_v18, %v409_v17  ;;  %v408_v22 = vld [vmem:[%s1743_s27 + $0x120] sm:$0xff]  ;;  %v410_v23 = vld [vmem:[%s1743_s27 + $0x130] sm:$0xff] }
  0x25   : > { %v452_v24 = vld [vmem:[%s1743_s27 + $0x280] sm:$0xf]  ;;  %v413_v25 = vld [vmem:[%s1743_s27 + $0x148] sm:$0xff]  ;;  %v415_v26 = vld [vmem:[%s1743_s27 + $0x158] sm:$0xff]  ;;  %v1396_v28 = vpack.c.bf16 %v410_v23, %v408_v22 }
  0x26   : > { %1377 = vmatpush1.bf16.msra.mxu1 %v1376_v34  ;;  %1433 = vmatpush1.bf16.msra.mxu0 %v1432_v2  ;;  %v326_v27 = vld [vmem:[%s2198_s2 + $0x10] sm:$0xff]  ;;  %v454_v29 = vld [vmem:[%s2199_s3] sm:$0xff]  ;;  %v1398_v30 = vpack.c.bf16 %v415_v26, %v413_v25  ;;  %v417_v34 = vld [vmem:[%s1743_s27 + $0x168] sm:$0xff] }
  0x27   : > { %1379 = vmatprep.subr.bf16.mxu1 %v1378_v38  ;;  %1435 = vmatprep.subr.bf16.mxu0 %v1434_v7  ;;  %v412_v31 = vld [vmem:[%s1743_s27 + $0x140] sm:$0xff]  ;;  %v414_v32 = vld [vmem:[%s1743_s27 + $0x150] sm:$0xff]  ;;  %v419_v35 = vld [vmem:[%s1743_s27 + $0x178] sm:$0xff] }
  0x28   : > { %v456_v33 = vld [vmem:[%s2199_s3 + $0x10] sm:$0xff]  ;;  %v329_v36 = vld [vmem:[%s2198_s2 + $0x28] sm:$0xff]  ;;  %472 = vperm.xlu0 %1529, %v454_v29   ;;  %v1400_v38 = vpack.c.bf16 %v414_v32, %v412_v31  ;;  %v457_v39 = vld [vmem:[%s2199_s3 + $0x18] sm:$0xff]  ;;  %v1402_v40 = vpack.c.bf16 %v419_v35, %v417_v34 }
  0x29   : > { %v455_v37 = vld [vmem:[%s2199_s3 + $0x8] sm:$0xff]  ;;  %482 = vperm.xlu1 %1530, %v456_v33   ;;  %v416_v41 = vld [vmem:[%s1743_s27 + $0x160] sm:$0xff]  ;;  %v418_v42 = vld [vmem:[%s1743_s27 + $0x170] sm:$0xff] }
  0x2a   : > { %1381 = vmatpush1.bf16.msra.mxu1 %v1380_v48  ;;  %1437 = vmatpush1.bf16.msra.mxu0 %v1436_v13  ;;  %v421_v43 = vld [vmem:[%s1743_s27 + $0x188] sm:$0xff]  ;;  %v423_v44 = vld [vmem:[%s1743_s27 + $0x198] sm:$0xff]  ;;  %v332_v45 = vld [vmem:[%s2198_s2 + $0x40] sm:$0xff]  ;;  %v1404_v47 = vpack.c.bf16 %v418_v42, %v416_v41 }
  0x2b   : > { %1383 = vmatprep.subr.bf16.mxu1 %v1382_v53  ;;  %1311 = vmatprep.subr.msk.mxu0 %vm599_vm0, %v453_v19  ;;  %v458_v46 = vld [vmem:[%s2199_s3 + $0x20] sm:$0xff]  ;;  %v459_v48 = vld [vmem:[%s2199_s3 + $0x28] sm:$0xff]  ;;  %v1406_v49 = vpack.c.bf16 %v423_v44, %v421_v43  ;;  %v422_v51 = vld [vmem:[%s1743_s27 + $0x190] sm:$0xff] }
  0x2c   : > { %477 = vperm.xlu0 %1529, %v455_v37   ;;  %v420_v50 = vld [vmem:[%s1743_s27 + $0x180] sm:$0xff]  ;;  %v425_v52 = vld [vmem:[%s1743_s27 + $0x1a8] sm:$0xff]  ;;  %v427_v53 = vld [vmem:[%s1743_s27 + $0x1b8] sm:$0xff] }
  0x2d   : > { %487 = vperm.xlu1 %1530, %v457_v39   ;;  %v335_v54 = vld [vmem:[%s2198_s2 + $0x58] sm:$0xff]  ;;  %v460_v55 = vld [vmem:[%s2199_s3 + $0x30] sm:$0xff]  ;;  %v1408_v56 = vpack.c.bf16 %v422_v51, %v420_v50  ;;  %v1410_v58 = vpack.c.bf16 %v427_v53, %v425_v52  ;;  %v424_v59 = vld [vmem:[%s1743_s27 + $0x1a0] sm:$0xff] }
  0x2e   : > { %1385 = vmatpush1.bf16.msra.mxu1 %v1384_v63  ;;  %1312 = vmatpush1.msk.msra.mxu0 %vm599_vm0, %v452_v24  ;;  %v461_v57 = vld [vmem:[%s2199_s3 + $0x38] sm:$0xff]  ;;  %v426_v60 = vld [vmem:[%s1743_s27 + $0x1b0] sm:$0xff]  ;;  %v429_v61 = vld [vmem:[%s1743_s27 + $0x1c8] sm:$0xff] }
  0x2f   : > { %1387 = vmatprep.subr.bf16.mxu1 %v1386_v5  ;;  %1313 = vmatmul.mubr.msk.f32.vlgmr.msra.gmra.mrb[0].mxu0 %vm550_vm1, %v326_v27  ;;  %v431_v62 = vld [vmem:[%s1743_s27 + $0x1d8] sm:$0xff]  ;;  %v338_v63 = vld [vmem:[%s2198_s2 + $0x70] sm:$0xff]  ;;  %v462_v0 = vld [vmem:[%s2199_s3 + $0x40] sm:$0xff]  ;;  %v1412_v2 = vpack.c.bf16 %v426_v60, %v424_v59 }
  0x30   : > { %837 = vmatprep.mubr.f32.mxu0 %v1683_v1  ;;  %492 = vperm.xlu0 %1529, %v458_v46   ;;  %v463_v3 = vld [vmem:[%s2199_s3 + $0x48] sm:$0xff]  ;;  %v1414_v4 = vpack.c.bf16 %v431_v62, %v429_v61  ;;  %v428_v5 = vld [vmem:[%s1743_s27 + $0x1c0] sm:$0xff]  ;;  %v430_v6 = vld [vmem:[%s1743_s27 + $0x1d0] sm:$0xff] }
  0x31   : > { %497 = vperm.xlu1 %1530, %v459_v48   ;;  %v433_v7 = vld [vmem:[%s1743_s27 + $0x1e8] sm:$0xff]  ;;  %v435_v8 = vld [vmem:[%s1743_s27 + $0x1f8] sm:$0xff]  ;;  %v464_v10 = vld [vmem:[%s2199_s3 + $0x50] sm:$0xff]  ;;  %v1416_v11 = vpack.c.bf16 %v430_v6, %v428_v5 }
  0x32   : > { %1389 = vmatpush1.bf16.msra.mxu1 %v1388_v12  ;;  %v341_v9 = vld [vmem:[%s2198_s2 + $0x88] sm:$0xff]  ;;  %v465_v12 = vld [vmem:[%s2199_s3 + $0x58] sm:$0xff]  ;;  %v1418_v13 = vpack.c.bf16 %v435_v8, %v433_v7  ;;  %v434_v15 = vld [vmem:[%s1743_s27 + $0x1f0] sm:$0xff] }
  0x33   : > { %1391 = vmatprep.subr.bf16.mxu1 %v1390_v14  ;;  %1314 = vmatmul.mubr.msk.f32.gmra.mrb[2].mxu0 %vm550_vm1, %v329_v36  ;;  %v432_v14 = vld [vmem:[%s1743_s27 + $0x1e0] sm:$0xff]  ;;  %v467_v19 = vld [vmem:[%s2199_s3 + $0x68] sm:$0xff]  ;;  %v469_v23 = vld [vmem:[%s2199_s3 + $0x78] sm:$0xff]  ;;  %s2128_s27 = sshll.u32 %s2207_s18, 6 }
  0x34   : > { %843 = vmatprep.mubr.f32.mxu0 %v1683_v1  ;;  %502 = vperm.xlu0 %1529, %v460_v55   ;;  %v344_v16 = vld [vmem:[%s2198_s2 + $0xa0] sm:$0xff]  ;;  %v1420_v18 = vpack.c.bf16 %v434_v15, %v432_v14  ;;  %v350_v25 = vld [vmem:[%s2198_s2 + $0xd0] sm:$0xff]  ;;  %v327_v26 = vld [vmem:[%s2198_s2 + $0x18] sm:$0xff]  ;;  %s2136_s18 = scalar_lea.vmem %s2197_s1, %s2128_s27  ;;  %s2150_s9 = scalar_lea.vmem %s2201_s5, %s2128_s27 }
  0x35   : > { %507 = vperm.xlu1 %1530, %v461_v57   ;;  %v466_v17 = vld [vmem:[%s2199_s3 + $0x60] sm:$0xff]  ;;  %v331_v27 = vld [vmem:[%s2198_s2 + $0x38] sm:$0xff]  ;;  %v330_v29 = vld [vmem:[%s2198_s2 + $0x30] sm:$0xff]  ;;  %s2174_s12 = scalar_lea.vmem %s2200_s4, %s2128_s27 }
  0x36   : > { %1393 = vmatpush1.bf16.msra.mxu1 %v1392_v20  ;;  %v347_v20 = vld [vmem:[%s2198_s2 + $0xb8] sm:$0xff]  ;;  %v324_v22 = vld [vmem:[%s2198_s2] sm:$0xff]  ;;  %v333_v32 = vld [vmem:[%s2198_s2 + $0x48] sm:$0xff] }
  0x37   : > { %1395 = vmatprep.subr.bf16.mxu1 %v1394_v21  ;;  %1315 = vmatmul.mubr.msk.f32.gmra.mrb[4].mxu0 %vm550_vm1, %v332_v45  ;;  %v468_v21 = vld [vmem:[%s2199_s3 + $0x70] sm:$0xff]  ;;  %v328_v24 = vld [vmem:[%s2198_s2 + $0x20] sm:$0xff]  ;;  %v337_v33 = vld [vmem:[%s2198_s2 + $0x68] sm:$0xff] }
  0x38   : > { %849 = vmatprep.mubr.f32.mxu0 %v1683_v1  ;;  %512 = vperm.xlu0 %1529, %v462_v0   ;;  %v356_v31 = vld [vmem:[%s2198_s2 + $0x100] sm:$0xff]  ;;  %v359_v34 = vld [vmem:[%s2198_s2 + $0x118] sm:$0xff]  ;;  %v362_v37 = vld [vmem:[%s2198_s2 + $0x130] sm:$0xff] }
  0x39   : > { %517 = vperm.xlu1 %1530, %v463_v3   ;;  %v336_v35 = vld [vmem:[%s2198_s2 + $0x60] sm:$0xff]  ;;  %v343_v39 = vld [vmem:[%s2198_s2 + $0x98] sm:$0xff]  ;;  %v342_v41 = vld [vmem:[%s2198_s2 + $0x90] sm:$0xff] }
  0x3a   : > { %1397 = vmatpush1.bf16.msra.mxu1 %v1396_v28  ;;  %v353_v28 = vld [vmem:[%s2198_s2 + $0xe8] sm:$0xff]  ;;  %v340_v36 = vld [vmem:[%s2198_s2 + $0x80] sm:$0xff]  ;;  %v346_v42 = vld [vmem:[%s2198_s2 + $0xb0] sm:$0xff] }
  0x3b   : > { %1399 = vmatprep.subr.bf16.mxu1 %v1398_v30  ;;  %1316 = vmatmul.mubr.msk.f32.gmra.mrb[6].mxu0 %vm550_vm1, %v335_v54  ;;  %v334_v30 = vld [vmem:[%s2198_s2 + $0x50] sm:$0xff]  ;;  %v368_v43 = vld [vmem:[%s2198_s2 + $0x160] sm:$0xff]  ;;  %v345_v44 = vld [vmem:[%s2198_s2 + $0xa8] sm:$0xff] }
  0x3c   : > { %855 = vmatprep.mubr.f32.mxu0 %v1683_v1  ;;  %522 = vperm.xlu0 %1529, %v464_v10   ;;  %v349_v45 = vld [vmem:[%s2198_s2 + $0xc8] sm:$0xff]  ;;  %v371_v46 = vld [vmem:[%s2198_s2 + $0x178] sm:$0xff]  ;;  %v352_v48 = vld [vmem:[%s2198_s2 + $0xe0] sm:$0xff] }
  0x3d   : > { %527 = vperm.xlu1 %1530, %v465_v12   ;;  %v354_v50 = vld [vmem:[%s2198_s2 + $0xf0] sm:$0xff]  ;;  %v357_v52 = vld [vmem:[%s2198_s2 + $0x108] sm:$0xff]  ;;  %v360_v54 = vld [vmem:[%s2198_s2 + $0x120] sm:$0xff] }
  0x3e   : > { %1401 = vmatpush1.bf16.msra.mxu1 %v1400_v38  ;;  %v339_v38 = vld [vmem:[%s2198_s2 + $0x78] sm:$0xff]  ;;  %v358_v51 = vld [vmem:[%s2198_s2 + $0x110] sm:$0xff]  ;;  %v361_v53 = vld [vmem:[%s2198_s2 + $0x128] sm:$0xff] }
  0x3f   : > { %1403 = vmatprep.subr.bf16.mxu1 %v1402_v40  ;;  %1317 = vmatmul.mubr.msk.f32.gmra.mrb[8].mxu0 %vm550_vm1, %v338_v63  ;;  %v365_v40 = vld [vmem:[%s2198_s2 + $0x148] sm:$0xff]  ;;  %v364_v55 = vld [vmem:[%s2198_s2 + $0x140] sm:$0xff]  ;;  %v367_v57 = vld [vmem:[%s2198_s2 + $0x158] sm:$0xff] }
  0x40   : > { %861 = vmatprep.mubr.f32.mxu0 %v1683_v1  ;;  %532 = vperm.xlu0 %1529, %v466_v17   ;;  %v370_v59 = vld [vmem:[%s2198_s2 + $0x170] sm:$0xff]  ;;  %v369_v60 = vld [vmem:[%s2198_s2 + $0x168] sm:$0xff] }
  0x41   : > { %537 = vperm.xlu1 %1530, %v467_v19  }
  0x42   : > { %1405 = vmatpush1.bf16.msra.mxu1 %v1404_v47  ;;  %v348_v47 = vld [vmem:[%s2198_s2 + $0xc0] sm:$0xff] }
  0x43   : > { %1407 = vmatprep.subr.bf16.mxu1 %v1406_v49  ;;  %1318 = vmatmul.mubr.msk.f32.gmra.mrb[10].mxu0 %vm550_vm1, %v341_v9  ;;  %v355_v49 = vld [vmem:[%s2198_s2 + $0xf8] sm:$0xff] }
  0x44   : > { %867 = vmatprep.mubr.f32.mxu0 %v1683_v1  ;;  %542 = vperm.xlu0 %1529, %v468_v21  }
  0x45   : > { %547 = vperm.xlu1 %1530, %v469_v23  }
  0x46   : > { %1409 = vmatpush1.bf16.msra.mxu1 %v1408_v56  ;;  %v363_v56 = vld [vmem:[%s2198_s2 + $0x138] sm:$0xff] }
  0x47   : > { %1411 = vmatprep.subr.bf16.mxu1 %v1410_v58  ;;  %1319 = vmatmul.mubr.msk.f32.gmra.mrb[12].mxu0 %vm550_vm1, %v344_v16  ;;  %v366_v58 = vld [vmem:[%s2198_s2 + $0x150] sm:$0xff] }
  0x48   : > { %873 = vmatprep.mubr.f32.mxu0 %v1683_v1 }
  0x4a   : > { %1413 = vmatpush1.bf16.msra.mxu1 %v1412_v2 }
  0x4b   : > { %1415 = vmatprep.subr.bf16.mxu1 %v1414_v4  ;;  %1320 = vmatmul.mubr.msk.f32.gmra.mrb[14].mxu0 %vm550_vm1, %v347_v20 }
  0x4c   : > { %879 = vmatprep.mubr.f32.mxu0 %v1683_v1 }
  0x4e   : > { %1417 = vmatpush1.bf16.msra.mxu1 %v1416_v11 }
  0x4f   : > { %1419 = vmatprep.subr.bf16.mxu1 %v1418_v13  ;;  %1321 = vmatmul.mubr.msk.f32.gmra.mrb[16].mxu0 %vm550_vm1, %v350_v25 }
  0x50   : > { %885 = vmatprep.mubr.f32.mxu0 %v1683_v1 }
  0x52   : > { %1421 = vmatpush1.bf16.msra.mxu1 %v1420_v18 }
  0x53   : > { %1322 = vmatmul.mubr.msk.f32.gmra.mrb[18].mxu0 %vm550_vm1, %v353_v28 }
  0x54   : > { %891 = vmatprep.mubr.f32.mxu0 %v1683_v1 }
  0x55   : > { %671 = vmatmul.mubr.f32.vlgmr.msra.gmra.mrb[0].mxu1 %v324_v22 }
  0x56   : > { %676 = vmatprep.mubr.f32.mxu1 %v328_v24 }
  0x57   : > { %1323 = vmatmul.mubr.msk.f32.gmra.mrb[20].mxu0 %vm550_vm1, %v356_v31 }
  0x58   : > { %897 = vmatprep.mubr.f32.mxu0 %v1683_v1 }
  0x59   : > { %677 = vmatmul.mubr.f32.gmra.mrb[2].mxu1 %v327_v26 }
  0x5a   : > { %682 = vmatprep.mubr.f32.mxu1 %v331_v27 }
  0x5b   : > { %1324 = vmatmul.mubr.msk.f32.gmra.mrb[22].mxu0 %vm550_vm1, %v359_v34 }
  0x5c   : > { %903 = vmatprep.mubr.f32.mxu0 %v1683_v1 }
  0x5d   : > { %683 = vmatmul.mubr.f32.gmra.mrb[4].mxu1 %v330_v29 }
  0x5e   : > { %688 = vmatprep.mubr.f32.mxu1 %v334_v30 }
  0x5f   : > { %1325 = vmatmul.mubr.msk.f32.gmra.mrb[24].mxu0 %vm550_vm1, %v362_v37 }
  0x60   : > { %909 = vmatprep.mubr.f32.mxu0 %v1683_v1 }
  0x61   : > { %689 = vmatmul.mubr.f32.gmra.mrb[6].mxu1 %v333_v32 }
  0x62   : > { %694 = vmatprep.mubr.f32.mxu1 %v337_v33 }
  0x63   : > { %1326 = vmatmul.mubr.msk.f32.gmra.mrb[26].mxu0 %vm550_vm1, %v365_v40 }
  0x64   : > { %915 = vmatprep.mubr.f32.mxu0 %v1683_v1 }
  0x65   : > { %695 = vmatmul.mubr.f32.gmra.mrb[8].mxu1 %v336_v35 }
  0x66   : > { %700 = vmatprep.mubr.f32.mxu1 %v340_v36 }
  0x67   : > { %1327 = vmatmul.mubr.msk.f32.gmra.mrb[28].mxu0 %vm550_vm1, %v368_v43 }
  0x68   : > { %921 = vmatprep.mubr.f32.mxu0 %v1683_v1  ;;  %v351_v1 = vld [vmem:[%s2198_s2 + $0xd8] sm:$0xff] }
  0x69   : > { %701 = vmatmul.mubr.f32.gmra.mrb[10].mxu1 %v339_v38 }
  0x6a   : > { %706 = vmatprep.mubr.f32.mxu1 %v343_v39 }
  0x6b   : > { %1328 = vmatmul.mubr.msk.f32.gmra.mrb[30].mxu0 %vm550_vm1, %v371_v46 }
  0x6d   : > { %707 = vmatmul.mubr.f32.gmra.mrb[12].mxu1 %v342_v41 }
  0x6e   : > { %712 = vmatprep.mubr.f32.mxu1 %v346_v42 }
  0x71   : > { %713 = vmatmul.mubr.f32.gmra.mrb[14].mxu1 %v345_v44 }
  0x72   : > { %718 = vmatprep.mubr.f32.mxu1 %v349_v45 }
  0x75   : > { %719 = vmatmul.mubr.f32.gmra.mrb[16].mxu1 %v348_v47 }
  0x76   : > { %724 = vmatprep.mubr.f32.mxu1 %v352_v48 }
  0x79   : > { %725 = vmatmul.mubr.f32.gmra.mrb[18].mxu1 %v351_v1 }
  0x7a   : > { %730 = vmatprep.mubr.f32.mxu1 %v355_v49 }
  0x7d   : > { %731 = vmatmul.mubr.f32.gmra.mrb[20].mxu1 %v354_v50 }
  0x7e   : > { %736 = vmatprep.mubr.f32.mxu1 %v358_v51 }
  0x81   : > { %737 = vmatmul.mubr.f32.gmra.mrb[22].mxu1 %v357_v52 }
  0x82   : > { %742 = vmatprep.mubr.f32.mxu1 %v361_v53 }
  0x85   : > { %743 = vmatmul.mubr.f32.gmra.mrb[24].mxu1 %v360_v54 }
  0x86   : > { %748 = vmatprep.mubr.f32.mxu1 %v364_v55 }
  0x89   : > { %749 = vmatmul.mubr.f32.gmra.mrb[26].mxu1 %v363_v56 }
  0x8a   : > { %754 = vmatprep.mubr.f32.mxu1 %v367_v57 }
  0x8d   : > { %755 = vmatmul.mubr.f32.gmra.mrb[28].mxu1 %v366_v58 }
  0x8e   : > { %760 = vmatprep.mubr.f32.mxu1 %v370_v59 }
  0x91   : > { %761 = vmatmul.mubr.f32.gmra.mrb[30].mxu1 %v369_v60 }
  0xa7   : > { %v473_v12 = vpop.permute.xlu0 %472 }
  0xa8   : > { %v483_v27 = vpop.permute.xlu1 %482 }
  0xab   : > { %v478_v19 = vpop.permute.xlu0 %477 }
  0xac   : > { %v488_v41 = vpop.permute.xlu1 %487 }
  0xaf   : > { %v493_v51 = vpop.permute.xlu0 %492 }
 0x102   : > { %v833_v61 = vpop.f32.mrb[0].mxu0 }
 0x103   : > { %v835_v62 = vpop.f32.mrb[1].mxu0 }
 0x106   : > { %v839_v63 = vpop.f32.mrb[2].mxu0 }
 0x107   : > { %v841_v0 = vpop.f32.mrb[3].mxu0 }
 0x10a   : > { %v845_v2 = vpop.f32.mrb[4].mxu0 }
 0x10b   : > { %v847_v3 = vpop.f32.mrb[5].mxu0 }
 0x10e   : > { %v851_v4 = vpop.f32.mrb[6].mxu0 }
 0x10f   : > { %v853_v5 = vpop.f32.mrb[7].mxu0 }
 0x112   : > { %v857_v6 = vpop.f32.mrb[8].mxu0 }
 0x113   : > { %v859_v7 = vpop.f32.mrb[9].mxu0 }
 0x116   : > { %v2049_v8 = vpop.f32.mrb[10].mxu0 }
 0x117   : > { %v2051_v9 = vpop.f32.mrb[11].mxu0 }
 0x11a   : > { %v2053_v10 = vpop.f32.mrb[12].mxu0 }
 0x11b   : > { %v2055_v11 = vpop.f32.mrb[13].mxu0 }
 0x11e   : > { %v2057_v13 = vpop.f32.mrb[14].mxu0 }
 0x11f   : > { %v2059_v14 = vpop.f32.mrb[15].mxu0 }
 0x122   : > { %v2061_v20 = vpop.f32.mrb[16].mxu0 }
 0x123   : > { %v2063_v22 = vpop.f32.mrb[17].mxu0 }
 0x126   : > { %v2065_v29 = vpop.f32.mrb[18].mxu0 }
 0x127   : > { %v2067_v31 = vpop.f32.mrb[19].mxu0 }
 0x128   : > { %v672_v15 = vpop.f32.mrb[0].mxu1 }
 0x129   : > { %v673_v16 = vadd.f32 %v672_v15, %v473_v12  ;;  %v674_v17 = vpop.f32.mrb[1].mxu1 }
 0x12a   : > { %v675_v18 = vadd.f32 %v674_v17, %v473_v12  ;;  %v2069_v37 = vpop.f32.mrb[20].mxu0 }
 0x12b   : > { %v834_v21 = vadd.f32 %v833_v61, %v673_v16  ;;  %v2071_v40 = vpop.f32.mrb[21].mxu0 }
 0x12c   : > { %v836_v23 = vadd.f32 %v835_v62, %v675_v18  ;;  %v678_v24 = vpop.f32.mrb[2].mxu1 }
 0x12d   : > { %v679_v25 = vadd.f32 %v678_v24, %v478_v19  ;;  %v680_v26 = vpop.f32.mrb[3].mxu1  ;;  %v1329_v38 = vmul.f32 -1.442695, %v834_v21 }
 0x12e   : > { %v681_v28 = vadd.f32 %v680_v26, %v478_v19  ;;  %v1330_v46 = vmul.f32 -1.442695, %v836_v23  ;;  %v2073_v48 = vpop.f32.mrb[22].mxu0  ;;  %v503_v19 = vpop.permute.xlu0 %502 }
 0x12f   : > { %v840_v30 = vadd.f32 %v839_v63, %v679_v25  ;;  %1531 = vpow2.f32 %v1329_v38  ;;  %v2075_v49 = vpop.f32.mrb[23].mxu0  ;;  %v498_v63 = vpop.permute.xlu1 %497 }
 0x130   : > { %v842_v32 = vadd.f32 %v841_v0, %v681_v28  ;;  %v684_v33 = vpop.f32.mrb[4].mxu1  ;;  %1533 = vpow2.f32 %v1330_v46 }
 0x131   : > { %v685_v34 = vadd.f32 %v684_v33, %v483_v27  ;;  %v686_v35 = vpop.f32.mrb[5].mxu1  ;;  %v1331_v50 = vmul.f32 -1.442695, %v840_v30 }
 0x132   : > { %v687_v36 = vadd.f32 %v686_v35, %v483_v27  ;;  %v1332_v54 = vmul.f32 -1.442695, %v842_v32  ;;  %v2077_v59 = vpop.f32.mrb[24].mxu0 }
 0x133   : > { %v846_v39 = vadd.f32 %v845_v2, %v685_v34  ;;  %v2079_v62 = vpop.f32.mrb[25].mxu0  ;;  %1535 = vpow2.f32 %v1331_v50  ;;  %v508_v35 = vpop.permute.xlu1 %507 }
 0x134   : > { %v848_v42 = vadd.f32 %v847_v3, %v687_v36  ;;  %v690_v43 = vpop.f32.mrb[6].mxu1  ;;  %1537 = vpow2.f32 %v1332_v54 }
 0x135   : > { %v691_v44 = vadd.f32 %v690_v43, %v488_v41  ;;  %v692_v45 = vpop.f32.mrb[7].mxu1  ;;  %v1333_v57 = vmul.f32 -1.442695, %v846_v39 }
 0x136   : > { %v693_v47 = vadd.f32 %v692_v45, %v488_v41  ;;  %v1334_v60 = vmul.f32 -1.442695, %v848_v42  ;;  %v2081_v16 = vpop.f32.mrb[26].mxu0 }
 0x137   : > { %v852_v1 = vadd.f32 %v851_v4, %v691_v44  ;;  %1539 = vpow2.f32 %v1333_v57 }
 0x138   : > { %v854_v52 = vadd.f32 %v853_v5, %v693_v47  ;;  %v696_v53 = vpop.f32.mrb[8].mxu1  ;;  %1541 = vpow2.f32 %v1334_v60 }
 0x139   : > { %v697_v55 = vadd.f32 %v696_v53, %v493_v51  ;;  %v698_v56 = vpop.f32.mrb[9].mxu1  ;;  %v1335_v0 = vmul.f32 -1.442695, %v852_v1  ;;  %v1532_v23 = vpop.eup %1531 }
 0x13a   : > { %v699_v58 = vadd.f32 %v698_v56, %v493_v51  ;;  %v1336_v4 = vmul.f32 -1.442695, %v854_v52  ;;  %v1534_v33 = vpop.eup %1533  ;;  %v1000_v34 = vadd.f32 1.0, %v1532_v23 }
 0x13b   : > { %v858_v61 = vadd.f32 %v857_v6, %v697_v55  ;;  %v2084_v6 = vpop.f32.mrb[27].mxu0  ;;  %1543 = vpow2.f32 %v1335_v0 }
 0x13c   : > { %v860_v2 = vadd.f32 %v859_v7, %v699_v58  ;;  %v702_v3 = vpop.f32.mrb[10].mxu1  ;;  %1545 = vpow2.f32 %v1336_v4  ;;  %v2087_v30 = vpop.f32.mrb[28].mxu0 }
 0x13d   : > { %v703_v5 = vadd.f32 %v702_v3, %v498_v63  ;;  %v704_v12 = vpop.f32.mrb[11].mxu1  ;;  %v1337_v17 = vmul.f32 -1.442695, %v858_v61  ;;  %v1536_v42 = vpop.eup %1535 }
 0x13e   : > { %v705_v15 = vadd.f32 %v704_v12, %v498_v63  ;;  %v1338_v24 = vmul.f32 -1.442695, %v860_v2  ;;  %v1538_v46 = vpop.eup %1537  ;;  %v1002_v55 = vadd.f32 1.0, %v1536_v42  ;;  %v518_v3 = vpop.permute.xlu1 %517 }
 0x13f   : > { %v864_v18 = vadd.f32 %v2049_v8, %v703_v5  ;;  %1547 = vpow2.f32 %v1337_v17  ;;  %v2090_v8 = vpop.f32.mrb[29].mxu0  ;;  %v1003_v60 = vadd.f32 1.0, %v1538_v46 }
 0x140   : > { %v866_v21 = vadd.f32 %v2051_v9, %v705_v15  ;;  %v708_v7 = vpop.f32.mrb[12].mxu1  ;;  %1549 = vpow2.f32 %v1338_v24  ;;  %v2093_v45 = vpop.f32.mrb[30].mxu0 }
 0x141   : > { %v709_v25 = vadd.f32 %v708_v7, %v503_v19  ;;  %v710_v26 = vpop.f32.mrb[13].mxu1  ;;  %v1339_v27 = vmul.f32 -1.442695, %v864_v18  ;;  %v2096_v1 = vpop.f32.mrb[31].mxu0 }
 0x142   : > { %v711_v28 = vadd.f32 %v710_v26, %v503_v19  ;;  %v1340_v38 = vmul.f32 -1.442695, %v866_v21  ;;  %v1540_v50 = vpop.eup %1539 }
 0x143   : > { %v870_v32 = vadd.f32 %v2053_v10, %v709_v25  ;;  %1551 = vpow2.f32 %v1339_v27  ;;  %v1001_v10 = vadd.f32 1.0, %v1534_v33  ;;  %v1542_v54 = vpop.eup %1541 }
 0x144   : > { %v872_v9 = vadd.f32 %v2055_v11, %v711_v28  ;;  %v714_v36 = vpop.f32.mrb[14].mxu1  ;;  %1553 = vrcp.f32 %v1000_v34  ;;  %v513_v11 = vpop.permute.xlu0 %512  ;;  %v1005_v2 = vadd.f32 1.0, %v1542_v54 }
 0x145   : > { %v715_v39 = vadd.f32 %v714_v36, %v508_v35  ;;  %v716_v41 = vpop.f32.mrb[15].mxu1  ;;  %v1341_v43 = vmul.f32 -1.442695, %v870_v32  ;;  %1555 = vpow2.f32 %v1340_v38  ;;  %v1544_v58 = vpop.eup %1543 }
 0x146   : > { %v717_v44 = vadd.f32 %v716_v41, %v508_v35  ;;  %v1342_v51 = vmul.f32 -1.442695, %v872_v9  ;;  %v1546_v63 = vpop.eup %1545  ;;  %v1006_v12 = vadd.f32 1.0, %v1544_v58 }
 0x147   : > { %v876_v47 = vadd.f32 %v2057_v13, %v715_v39  ;;  %1557 = vpow2.f32 %v1341_v43  ;;  %v1004_v13 = vadd.f32 1.0, %v1540_v50  ;;  %v1007_v18 = vadd.f32 1.0, %v1546_v63  ;;  %v528_v39 = vpop.permute.xlu1 %527 }
 0x148   : > { %v878_v52 = vadd.f32 %v2059_v14, %v717_v44  ;;  %v720_v53 = vpop.f32.mrb[16].mxu1  ;;  %1559 = vrcp.f32 %v1001_v10  ;;  %v523_v25 = vpop.permute.xlu0 %522 }
 0x149   : > { %v721_v56 = vadd.f32 %v720_v53, %v513_v11  ;;  %v722_v57 = vpop.f32.mrb[17].mxu1  ;;  %1561 = vpow2.f32 %v1342_v51  ;;  %v1548_v5 = vpop.eup %1547  ;;  %v1343_v7 = vmul.f32 -1.442695, %v876_v47 }
 0x14a   : > { %v723_v61 = vadd.f32 %v722_v57, %v513_v11  ;;  %1563 = vrcp.f32 %v1002_v55  ;;  %v1550_v21 = vpop.eup %1549  ;;  %v1008_v24 = vadd.f32 1.0, %v1548_v5  ;;  %v1344_v27 = vmul.f32 -1.442695, %v878_v52 }
 0x14b   : > { %v882_v0 = vadd.f32 %v2061_v20, %v721_v56  ;;  %1565 = vrcp.f32 %v1003_v60  ;;  %v1009_v34 = vadd.f32 1.0, %v1550_v21 }
 0x14c   : > { %v884_v14 = vadd.f32 %v2063_v22, %v723_v61  ;;  %v726_v4 = vpop.f32.mrb[18].mxu1  ;;  %1567 = vrcp.f32 %v1004_v13 }
 0x14d   : > { %v727_v15 = vadd.f32 %v726_v4, %v518_v3  ;;  %v728_v17 = vpop.f32.mrb[19].mxu1  ;;  %v1552_v20 = vpop.eup %1551  ;;  %1569 = vrcp.f32 %v1005_v2  ;;  %v1345_v41 = vmul.f32 -1.442695, %v882_v0 }
 0x14e   : > { %v729_v19 = vadd.f32 %v728_v17, %v518_v3  ;;  %1571 = vrcp.f32 %v1006_v12  ;;  %v2103_v33 = vpop.eup %1553  ;;  %v1010_v36 = vadd.f32 1.0, %v1552_v20  ;;  %v1346_v44 = vmul.f32 -1.442695, %v884_v14 }
 0x14f   : > { %v888_v23 = vadd.f32 %v2065_v29, %v727_v15  ;;  %1573 = vrcp.f32 %v1007_v18  ;;  %v1556_v9 = vpop.eup %1555 }
 0x150   : > { %v890_v22 = vadd.f32 %v2067_v31, %v729_v19  ;;  %v732_v26 = vpop.f32.mrb[20].mxu1  ;;  %1575 = vpow2.f32 %v1343_v7  ;;  %v1011_v50 = vadd.f32 1.0, %v1556_v9 }
 0x151   : > { %v733_v28 = vadd.f32 %v732_v26, %v523_v25  ;;  %v734_v32 = vpop.f32.mrb[21].mxu1  ;;  %v1558_v38 = vpop.eup %1557  ;;  %1577 = vrcp.f32 %v1008_v24  ;;  %v1347_v54 = vmul.f32 -1.442695, %v888_v23 }
 0x152   : > { %v735_v35 = vadd.f32 %v734_v32, %v523_v25  ;;  %v2107_v43 = vpop.eup %1559  ;;  %1579 = vpow2.f32 %v1344_v27  ;;  %v1348_v13 = vmul.f32 -1.442695, %v890_v22 }
 0x153   : > { %v894_v29 = vadd.f32 %v2069_v37, %v733_v28  ;;  %v1562_v47 = vpop.eup %1561  ;;  %1581 = vrcp.f32 %v1009_v34  ;;  %v1012_v37 = vadd.f32 1.0, %v1558_v38 }
 0x154   : > { %v896_v31 = vadd.f32 %v2071_v40, %v735_v35  ;;  %v738_v42 = vpop.f32.mrb[22].mxu1  ;;  %v2109_v51 = vpop.eup %1563  ;;  %1583 = vrcp.f32 %v1010_v36  ;;  %v1013_v58 = vadd.f32 1.0, %v1562_v47 }
 0x155   : > { %v739_v46 = vadd.f32 %v738_v42, %v528_v39  ;;  %v740_v10 = vpop.f32.mrb[23].mxu1  ;;  %v2112_v53 = vpop.eup %1565  ;;  %1585 = vpow2.f32 %v1345_v41  ;;  %v1349_v2 = vmul.f32 -1.442695, %v894_v29 }
 0x156   : > { %v741_v11 = vadd.f32 %v740_v10, %v528_v39  ;;  %v533_v40 = vpop.permute.xlu0 %532  ;;  %v2115_v57 = vpop.eup %1567  ;;  %1587 = vpow2.f32 %v1346_v44  ;;  %v1350_v19 = vmul.f32 -1.442695, %v896_v31 }
 0x157   : > { %v900_v52 = vadd.f32 %v2073_v48, %v739_v46  ;;  %v2117_v63 = vpop.eup %1569  ;;  %1589 = vrcp.f32 %v1011_v50  ;;  %v1080_v50 = vld [vmem:[%s2136_s18] sm:$0xff] }
 0x158   : > { %v902_v55 = vadd.f32 %v2075_v49, %v741_v11  ;;  %v744_v56 = vpop.f32.mrb[24].mxu1  ;;  %v2119_v48 = vpop.eup %1571  ;;  %1591 = vrcp.f32 %v1012_v37 }
 0x159   : > { %v745_v60 = vadd.f32 %v744_v56, %v533_v40  ;;  %v746_v61 = vpop.f32.mrb[25].mxu1  ;;  %v2122_v14 = vpop.eup %1573  ;;  %1593 = vpow2.f32 %v1347_v54  ;;  %v1351_v26 = vmul.f32 -1.442695, %v900_v52  ;;  %v1081_v52 = vld [vmem:[%s2136_s18 + $0x8] sm:$0xff] }
 0x15a   : > { %v747_v0 = vadd.f32 %v746_v61, %v533_v40  ;;  %v538_v49 = vpop.permute.xlu1 %537  ;;  %v1576_v12 = vpop.eup %1575  ;;  %1595 = vrcp.f32 %v1013_v58  ;;  %v1352_v34 = vmul.f32 -1.442695, %v902_v55  ;;  %v1082_v58 = vld [vmem:[%s2136_s18 + $0x10] sm:$0xff] }
 0x15b   : > { %v906_v3 = vadd.f32 %v2077_v59, %v745_v60  ;;  %v1578_v18 = vpop.eup %1577  ;;  %1597 = vpow2.f32 %v1348_v13  ;;  %v1014_v20 = vadd.f32 1.0, %v1576_v12  ;;  %v543_v24 = vpop.permute.xlu0 %542  ;;  %v1083_v12 = vld [vmem:[%s2136_s18 + $0x18] sm:$0xff] }
 0x15c   : > { %v908_v4 = vadd.f32 %v2079_v62, %v747_v0  ;;  %v750_v5 = vpop.f32.mrb[26].mxu1  ;;  %v1580_v7 = vpop.eup %1579  ;;  %1599 = vpow2.f32 %v1349_v2  ;;  %v1088_v56 = vmul.f32 %v1578_v18, %v1080_v50 }
 0x15d   : > { %v751_v15 = vadd.f32 %v750_v5, %v538_v49  ;;  %v752_v17 = vpop.f32.mrb[27].mxu1  ;;  %v1582_v23 = vpop.eup %1581  ;;  %1601 = vtanh.f32 %v906_v3  ;;  %v1015_v41 = vadd.f32 1.0, %v1580_v7 }
 0x15e   : > { %v753_v21 = vadd.f32 %v752_v17, %v538_v49  ;;  %v1584_v22 = vpop.eup %1583  ;;  %1603 = vtanh.f32 %v908_v4  ;;  %v1089_v61 = vmul.f32 %v1582_v23, %v1081_v52  ;;  %v1084_v17 = vld [vmem:[%s2136_s18 + $0x20] sm:$0xff] }
 0x15f   : > { %v912_v59 = vadd.f32 %v2081_v16, %v751_v15  ;;  %v1586_v32 = vpop.eup %1585  ;;  %1605 = vpow2.f32 %v1350_v19  ;;  %v1090_v3 = vmul.f32 %v1584_v22, %v1082_v58 }
 0x160   : > { %v914_v62 = vadd.f32 %v2084_v6, %v753_v21  ;;  %v756_v25 = vpop.f32.mrb[28].mxu1  ;;  %v1588_v16 = vpop.eup %1587 }
 0x161   : > { %v757_v27 = vadd.f32 %v756_v25, %v543_v24  ;;  %v758_v28 = vpop.f32.mrb[29].mxu1  ;;  %1607 = vtanh.f32 %v912_v59  ;;  %v1590_v36 = vpop.eup %1589  ;;  %v1017_v54 = vadd.f32 1.0, %v1588_v16 }
 0x162   : > { %v759_v35 = vadd.f32 %v758_v28, %v543_v24  ;;  %1609 = vrcp.f32 %v1014_v20  ;;  %v548_v6 = vpop.permute.xlu1 %547  ;;  %v1592_v39 = vpop.eup %1591 }
 0x163   : > { %v918_v9 = vadd.f32 %v2087_v30, %v757_v27  ;;  %1611 = vpow2.f32 %v1351_v26  ;;  %v1594_v44 = vpop.eup %1593  ;;  %v1016_v30 = vadd.f32 1.0, %v1586_v32  ;;  %v1092_v24 = vmul.f32 %v1592_v39, %v1084_v17  ;;  %v1086_v26 = vld [vmem:[%s2136_s18 + $0x30] sm:$0xff] }
 0x164   : > { %v920_v29 = vadd.f32 %v2090_v8, %v759_v35  ;;  %v762_v38 = vpop.f32.mrb[30].mxu1  ;;  %1613 = vpow2.f32 %v1352_v34  ;;  %v2138_v10 = vpop.eup %1595  ;;  %v1018_v0 = vadd.f32 1.0, %v1594_v44  ;;  %v1087_v34 = vld [vmem:[%s2136_s18 + $0x38] sm:$0xff] }
 0x165   : > { %v763_v31 = vadd.f32 %v762_v38, %v548_v6  ;;  %v764_v42 = vpop.f32.mrb[31].mxu1  ;;  %1615 = vtanh.f32 %v914_v62  ;;  %v1598_v47 = vpop.eup %1597  ;;  %v1085_v62 = vld [vmem:[%s2136_s18 + $0x28] sm:$0xff] }
 0x166   : > { %v765_v46 = vadd.f32 %v764_v42, %v548_v6  ;;  %1617 = vtanh.f32 %v918_v9  ;;  %v1600_v37 = vpop.eup %1599  ;;  %v1019_v15 = vadd.f32 1.0, %v1598_v47 }
 0x167   : > { %v924_v8 = vadd.f32 %v2093_v45, %v763_v31  ;;  %1619 = vrcp.f32 %v1015_v41  ;;  %v1602_v40 = vpop.eup %1601  ;;  %v1020_v18 = vadd.f32 1.0, %v1600_v37 }
 0x168   : > { %v926_v11 = vadd.f32 %v2096_v1, %v765_v46  ;;  %1621 = vrcp.f32 %v1016_v30  ;;  %v1604_v55 = vpop.eup %1603  ;;  %v1096_v60 = vmul.f32 %v1602_v40, %v2103_v33 }
 0x169   : > { %1623 = vtanh.f32 %v920_v29  ;;  %v1606_v45 = vpop.eup %1605  ;;  %v1097_v1 = vmul.f32 %v1604_v55, %v2107_v43 }
 0x16a   : > { %1625 = vtanh.f32 %v924_v8  ;;  %v1104_v2 = vadd.f32 %v1096_v60, %v1088_v56  ;;  %v1021_v7 = vadd.f32 1.0, %v1606_v45 }
 0x16b   : > { %v1608_v13 = vpop.eup %1607  ;;  %1627 = vtanh.f32 %v926_v11  ;;  %v1105_v49 = vadd.f32 %v1097_v1, %v1089_v61 }
 0x16c   : > { %v1610_v33 = vpop.eup %1609  ;;  %1629 = vrcp.f32 %v1017_v54  ;;  %v1098_v4 = vmul.f32 %v1608_v13, %v2109_v51  ;;  %1128 = vst [vmem:[%s2150_s9] sm:$0xff] %v1104_v2  ;;  %v1091_v51 = vmul.f32 %v1590_v36, %v1083_v12 }
 0x16d   : > { %v1612_v5 = vpop.eup %1611  ;;  %1631 = vtanh.f32 %v1104_v2  ;;  %1129 = vst [vmem:[%s2150_s9 + $0x8] sm:$0xff] %v1105_v49  ;;  %v1094_v6 = vmul.f32 %v1610_v33, %v1086_v26 }
 0x16e   : > { %v1614_v43 = vpop.eup %1613  ;;  %1633 = vtanh.f32 %v1105_v49  ;;  %v1106_v19 = vadd.f32 %v1098_v4, %v1090_v3  ;;  %v1022_v27 = vadd.f32 1.0, %v1612_v5 }
 0x16f   : > { %v1616_v21 = vpop.eup %1615  ;;  %1635 = vrcp.f32 %v1018_v0  ;;  %v1023_v35 = vadd.f32 1.0, %v1614_v43 }
 0x170   : > { %v1618_v59 = vpop.eup %1617  ;;  %1637 = vtanh.f32 %v1106_v19  ;;  %1130 = vst [vmem:[%s2150_s9 + $0x10] sm:$0xff] %v1106_v19  ;;  %v1099_v23 = vmul.f32 %v1616_v21, %v2112_v53  ;;  %v1093_v53 = vmul.f32 %v2138_v10, %v1085_v62 }
 0x171   : > { %v1620_v20 = vpop.eup %1619  ;;  %1639 = vrcp.f32 %v1019_v15  ;;  %v1100_v25 = vmul.f32 %v1618_v59, %v2115_v57 }
 0x172   : > { %v1622_v22 = vpop.eup %1621  ;;  %1641 = vrcp.f32 %v1020_v18  ;;  %v1107_v28 = vadd.f32 %v1099_v23, %v1091_v51  ;;  %v1095_v39 = vmul.f32 %v1620_v20, %v1087_v34 }
 0x173   : > { %v1624_v32 = vpop.eup %1623  ;;  %1643 = vrcp.f32 %v1021_v7  ;;  %v1108_v16 = vadd.f32 %v1100_v25, %v1092_v24 }
 0x174   : > { %v1626_v9 = vpop.eup %1625  ;;  %1645 = vtanh.f32 %v1107_v28  ;;  %1131 = vst [vmem:[%s2150_s9 + $0x18] sm:$0xff] %v1107_v28  ;;  %v1101_v36 = vmul.f32 %v1624_v32, %v2117_v63 }
 0x175   : > { %v1628_v57 = vpop.eup %1627  ;;  %1647 = vtanh.f32 %v1108_v16  ;;  %1132 = vst [vmem:[%s2150_s9 + $0x20] sm:$0xff] %v1108_v16  ;;  %v1102_v29 = vmul.f32 %v1626_v9, %v2119_v48 }
 0x176   : > { %v1630_v38 = vpop.eup %1629  ;;  %1649 = vrcp.f32 %v1022_v27  ;;  %v1109_v41 = vadd.f32 %v1101_v36, %v1093_v53  ;;  %v1103_v31 = vmul.f32 %v1628_v57, %v2122_v14 }
 0x177   : > { %v1632_v42 = vpop.eup %1631  ;;  %1651 = vrcp.f32 %v1023_v35  ;;  %v1110_v63 = vadd.f32 %v1102_v29, %v1094_v6 }
 0x178   : > { %v1634_v44 = vpop.eup %1633  ;;  %v1120_v48 = vmul.f32 %v1632_v42, %v1622_v22  ;;  %1653 = vtanh.f32 %v1109_v41  ;;  %1133 = vst [vmem:[%s2150_s9 + $0x28] sm:$0xff] %v1109_v41  ;;  %v1111_v30 = vadd.f32 %v1103_v31, %v1095_v39 }
 0x179   : > { %v1636_v46 = vpop.eup %1635  ;;  %v1121_v10 = vmul.f32 %v1634_v44, %v1630_v38  ;;  %1655 = vtanh.f32 %v1110_v63  ;;  %1134 = vst [vmem:[%s2150_s9 + $0x30] sm:$0xff] %v1110_v63 }
 0x17a   : > { %v1638_v14 = vpop.eup %1637  ;;  %1136 = vst [vmem:[%s2174_s12] sm:$0xff] %v1120_v48  ;;  %1657 = vtanh.f32 %v1111_v30  ;;  %1135 = vst [vmem:[%s2150_s9 + $0x38] sm:$0xff] %v1111_v30 }
 0x17b   : > { %v1640_v8 = vpop.eup %1639  ;;  %1137 = vst [vmem:[%s2174_s12 + $0x8] sm:$0xff] %v1121_v10  ;;  %v1122_v47 = vmul.f32 %v1638_v14, %v1636_v46 }
 0x17c   : > { %v1642_v50 = vpop.eup %1641 }
 0x17d   : > { %v1644_v11 = vpop.eup %1643  ;;  %1138 = vst [vmem:[%s2174_s12 + $0x10] sm:$0xff] %v1122_v47 }
 0x17e   : > { %v1646_v37 = vpop.eup %1645 }
 0x17f   : > { %v1648_v52 = vpop.eup %1647  ;;  %v1123_v40 = vmul.f32 %v1646_v37, %v1640_v8 }
 0x180   : > { %v1650_v54 = vpop.eup %1649  ;;  %v1124_v55 = vmul.f32 %v1648_v52, %v1642_v50 }
 0x181   : > { %v1652_v56 = vpop.eup %1651  ;;  %1139 = vst [vmem:[%s2174_s12 + $0x18] sm:$0xff] %v1123_v40 }
 0x182   : > { %v1654_v58 = vpop.eup %1653  ;;  %1140 = vst [vmem:[%s2174_s12 + $0x20] sm:$0xff] %v1124_v55 }
 0x183   : > { %v1656_v60 = vpop.eup %1655  ;;  %v1125_v45 = vmul.f32 %v1654_v58, %v1644_v11 }
 0x184   : > { %v1658_v61 = vpop.eup %1657  ;;  %v1126_v1 = vmul.f32 %v1656_v60, %v1650_v54 }
 0x185   : > { %1141 = vst [vmem:[%s2174_s12 + $0x28] sm:$0xff] %v1125_v45  ;;  %v1127_v13 = vmul.f32 %v1658_v61, %v1652_v56 }
 0x186   : > { %1142 = vst [vmem:[%s2174_s12 + $0x30] sm:$0xff] %v1126_v1 }
 0x187   : > { %1143 = vst [vmem:[%s2174_s12 + $0x38] sm:$0xff] %v1127_v13 }
 0x188 PF: > { %s16_s20 = sadd.s32 1, %s1681_s20   ;;  %s2202_s18 = smov %s1677_s19 }
 0x189   : > { %p13_p5 = scmp.ge.s32.totalorder %s16_s20, 4   ;;  %s2203_s19 = smov %s2205_s21 }
 0x18b   :  { %15 = sbr.rel (!%p13_p5) target bundleno = 2 (0x2), region = 81 }

</bundles_post_ra>
